<compile_context>
chip_gen: v7x
topology: tpu7x:2x2x1
jax: 0.10.0
libtpu: 0.0.40
codegen_flags: <defaults>
</compile_context>

<pallas_src>
import functools

import jax
import jax.numpy as jnp
from jax.experimental import pallas as pl
from jax.experimental.pallas import tpu as pltpu


def _cdiv(a, b):
    return -(-a // b)


def _round_up(a, b):
    return _cdiv(a, b) * b


# ---------------------------------------------------------------------------
# Kernels
# ---------------------------------------------------------------------------
def _kernel_direct(x_ref, w_ref, b_ref, o_ref):
    # f32 output: accumulate straight into the VMEM-resident output block.
    @pl.when(pl.program_id(2) == 0)
    def _init():
        o_ref[...] = jnp.broadcast_to(b_ref[...], o_ref.shape)

    o_ref[...] += jnp.dot(x_ref[...].astype(jnp.bfloat16), w_ref[...],
                          preferred_element_type=jnp.float32)


def _kernel_scratch(x_ref, w_ref, b_ref, o_ref, acc_ref):
    # non-f32 output: f32 scratch accumulator, single cast on the last K step.
    @pl.when(pl.program_id(2) == 0)
    def _init():
        acc_ref[...] = jnp.broadcast_to(b_ref[...], acc_ref.shape)

    acc_ref[...] += jnp.dot(x_ref[...].astype(jnp.bfloat16), w_ref[...],
                            preferred_element_type=jnp.float32)

    @pl.when(pl.program_id(2) == pl.num_programs(2) - 1)
    def _finalize():
        o_ref[...] = acc_ref[...].astype(o_ref.dtype)


# ---------------------------------------------------------------------------
# Tiling / hardware heuristics
# ---------------------------------------------------------------------------
def _hw_params():
    """Returns (vmem_limit_bytes, tensorcores_per_chip)."""
    vmem_cap = None
    try:
        vmem_cap = int(pltpu.get_tpu_info().vmem_capacity_bytes)
    except Exception:
        vmem_cap = None
    if vmem_cap is not None and vmem_cap > 64 * 1024 * 1024:
        # v5e / v6e class: 128 MiB VMEM, single TensorCore per chip.
        return 104 * 1024 * 1024, 1
    if vmem_cap is not None:
        # v7x class: 64 MiB VMEM per TensorCore, 2 TensorCores per chip.
        return 52 * 1024 * 1024, 2
    # Unknown: conservative limit, assume single core.
    return 52 * 1024 * 1024, 1


def _pick_tiles(M, K, N, D, *, tile_budget, cores, out_itemsize, use_scratch):
    # --- K tile: a divisor of K that is a multiple of 128 so the reduction never
    # sees a ragged block; otherwise keep the whole K resident.
    tk = K
    if D % 128 == 0:
        for cand in (512, 384, 256, 128):
            if D % cand == 0:
                tk = cand
                break
    # TODO(synk): if D is large and not a multiple of 128 the whole K stays
    # resident; add a masked K reduction for such shapes if they ever show up.

    def max_tm_for(tn):
        # double-buffered f32 x tile + bf16 w tile + out tile (+ f32 scratch) + bias.
        fixed = 2 * tk * tn * 2 + 2 * tn * 4
        per_row = 2 * tk * 4
        if use_scratch:
            per_row += 2 * tn * out_itemsize + tn * 4
        else:
            per_row += 2 * tn * 4
        avail = tile_budget - fixed
        return max(avail // per_row, 0)

    # --- N tile: prefer the whole output width (activations read from HBM exactly
    # once); fall back to lane-dense 128-multiples.
    tn_cands = [N]
    if N > 128:
        tn_cands += [c for c in (512, 256, 128) if c < N]
    tn = 128 if N >= 128 else N
    for cand in tn_cands:
        if max_tm_for(cand) >= min(M, 256):
            tn = cand
            break

    # --- M tile: as large as the budget allows (amortizes the ~0.35us/step
    # overhead), multiple of 256, capped at 4096.
    if M <= 512:
        tm = M
    else:
        cap = max((min(4096, max_tm_for(tn)) // 256) * 256, 256)
        tm = min(cap, _round_up(M, 256))
        # v7x: keep the number of parallel (i, j) grid points even so both
        # TensorCores stay busy.
        if cores >= 2 and (_cdiv(M, tm) * _cdiv(N, tn)) % 2 == 1:
            n_m = _cdiv(M, tm) + 1
            tm = min(tm, max(256, _round_up(_cdiv(M, n_m), 256)))
    return tm, tn, tk


# ---------------------------------------------------------------------------
# Wrapper
# ---------------------------------------------------------------------------
@functools.partial(jax.jit, static_argnames=("ratio",))
def conv_compress(mem, weight, bias, *, ratio=3):
    """mem: (B, T, D); weight: (D, D, ratio) [Conv1d layout]; bias: (D,).

    Returns (B, T // ratio, D), matching ConvCompress.forward (groups=1).
    """
    B, T, D = mem.shape
    T_c = T // ratio
    K = ratio * D
    N = D
    M = B * T_c

    # ---- layout-only glue (plain JAX) --------------------------------------
    # Contiguous slice + reshape is a free view when T == T_c * ratio; activations
    # stay in their original dtype (no wrapper-side bf16 materialization).
    x = mem[:, : T_c * ratio, :].reshape(M, K)
    # Wf[r*D + d_in, d_out] = weight[d_out, d_in, r]; weight is small -> bf16 here.
    w_flat = jnp.transpose(weight, (2, 1, 0)).reshape(K, N).astype(jnp.bfloat16)
    b_row = bias.astype(jnp.float32).reshape(1, N)

    use_scratch = mem.dtype != jnp.float32
    out_itemsize = jnp.dtype(mem.dtype).itemsize
    x_itemsize = jnp.dtype(mem.dtype).itemsize

    vmem_limit, cores = _hw_params()
    tile_budget = int(0.75 * vmem_limit)
    tm, tn, tk = _pick_tiles(M, K, N, D, tile_budget=tile_budget, cores=cores,
                             out_itemsize=out_itemsize, use_scratch=use_scratch)
    grid = (_cdiv(M, tm), _cdiv(N, tn), _cdiv(K, tk))

    cost = pl.CostEstimate(
        flops=2 * M * K * N,
        transcendentals=0,
        bytes_accessed=(M * K * x_itemsize * grid[1]     # x re-read once per N tile
                        + K * N * 2 * grid[0]            # bf16 w re-read once per M tile
                        + M * N * out_itemsize + N * 4),
    )

    kernel = _kernel_scratch if use_scratch else _kernel_direct
    scratch = [pltpu.VMEM((tm, tn), jnp.float32)] if use_scratch else []

    out = pl.pallas_call(
        kernel,
        out_shape=jax.ShapeDtypeStruct((M, N), mem.dtype),
        grid_spec=pltpu.PrefetchScalarGridSpec(
            num_scalar_prefetch=0,
            grid=grid,
            in_specs=[
                pl.BlockSpec((tm, tk), lambda i, j, k: (i, k)),   # activations (f32)
                pl.BlockSpec((tk, tn), lambda i, j, k: (k, j)),   # flat conv weight (bf16)
                pl.BlockSpec((1, tn), lambda i, j, k: (0, j)),    # bias row (f32)
            ],
            out_specs=pl.BlockSpec((tm, tn), lambda i, j, k: (i, j)),
            scratch_shapes=scratch,
        ),
        compiler_params=pltpu.CompilerParams(
            dimension_semantics=("parallel", "parallel", "arbitrary"),
            vmem_limit_bytes=int(vmem_limit),
        ),
        cost_estimate=cost,
    )(x, w_flat, b_row)

    return out.reshape(B, T_c, N)


# ---------------------------------------------------------------------------
# Reference + checks
# ---------------------------------------------------------------------------
def _reference(mem, weight, bias, ratio):
    # Pure-JAX reference of the same strided conv.
    B, T, D = mem.shape
    T_c = T // ratio
    x = mem[:, : T_c * ratio, :].reshape(B, T_c, ratio, D)
    # out[b,t,o] = sum_{r,i} x[b,t,r,i] * weight[o,i,r] + bias[o]
    return jnp.einsum("btri,oir->bto", x, weight,
                      preferred_element_type=jnp.float32) + bias[None, None, :]


def _check(B, T, D, ratio, key):
    k_mem, k_w, k_b = jax.random.split(key, 3)
    mem = jax.random.normal(k_mem, (B, T, D), dtype=jnp.float32)
    # Conv1d-style init: U(-k, k), k = 1/sqrt(in_channels * kernel_size).
    fan_in = D * ratio
    bound = 1.0 / float(fan_in) ** 0.5
    weight = jax.random.uniform(k_w, (D, D, ratio), jnp.float32, -bound, bound)
    bias = jax.random.uniform(k_b, (D,), jnp.float32, -bound, bound)

    out = jax.block_until_ready(conv_compress(mem, weight, bias, ratio=ratio))

    # Reference on the same bf16-quantized operands (kernel multiplies bf16
    # operands with f32 accumulation), so only summation-order error remains.
    mem_q = mem.astype(jnp.bfloat16).astype(jnp.float32)
    w_q = weight.astype(jnp.bfloat16).astype(jnp.float32)
    ref = _reference(mem_q, w_q, bias, ratio)

    assert out.shape == (B, T // ratio, D), out.shape
    err = float(jnp.max(jnp.abs(out - ref)))
    assert jnp.allclose(out, ref, atol=1e-3, rtol=1e-3), err


if __name__ == "__main__":
    key = jax.random.PRNGKey(0)
    k1, k2 = jax.random.split(key)
    # Small shape consistent with the module: batch=2, seq=18 (multiple of
    # ratio=3), hidden=32 -> whole-array blocks, single grid step.
    _check(B=2, T=18, D=32, ratio=3, key=k1)
    # Larger shape exercising the tiled path: M=1024, K=384 (tk=128 -> 3 K-steps),
    # lane-dense whole-width N tile; on v7x the M axis splits into two tiles.
    _check(B=2, T=1536, D=128, ratio=3, key=k2)
    print("KERNEL_OK")
</pallas_src>

<mosaic_0001>
module attributes {stable_mosaic.version = 11 : i64} {
  func.func @_kernel_direct(%arg0: i32, %arg1: i32, %arg2: i32, %arg3: memref<12x96xf32, #tpu.memory_space<vmem>>, %arg4: memref<96x32xbf16, #tpu.memory_space<vmem>>, %arg5: memref<1x32xf32, #tpu.memory_space<vmem>>, %arg6: memref<12x32xf32, #tpu.memory_space<vmem>>) attributes {dimension_semantics = [#tpu.dimension_semantics<parallel>, #tpu.dimension_semantics<parallel>, #tpu.dimension_semantics<arbitrary>], iteration_bounds = array<i64: 1, 1, 1>, scalar_prefetch = 0 : i64, scratch_operands = 0 : i64, tpu.core_type = #tpu.core_type<tc>, window_params = [{transform_indices = @transform_0, window_bounds = array<i64: 12, 96>}, {transform_indices = @transform_1, window_bounds = array<i64: 96, 32>}, {transform_indices = @transform_2, window_bounds = array<i64: 1, 32>}, {transform_indices = @transform_3, window_bounds = array<i64: 12, 32>}]} {
    %c0_i32 = arith.constant 0 : i32
    %0 = arith.cmpi eq, %arg2, %c0_i32 : i32
    %1 = arith.extui %0 : i1 to i32
    %c0_i32_0 = arith.constant 0 : i32
    %2 = arith.cmpi ne, %1, %c0_i32_0 : i32
    scf.if %2 {
      %c0_8 = arith.constant 0 : index
      %c0_9 = arith.constant 0 : index
      %10 = vector.load %arg5[%c0_8, %c0_9] : memref<1x32xf32, #tpu.memory_space<vmem>>, vector<1x32xf32>
      %11 = vector.shape_cast %10 : vector<1x32xf32> to vector<1x32xf32>
      %12 = vector.broadcast %11 : vector<1x32xf32> to vector<12x32xf32>
      %c0_10 = arith.constant 0 : index
      %c0_11 = arith.constant 0 : index
      %13 = vector.load %arg6[%c0_10, %c0_11] : memref<12x32xf32, #tpu.memory_space<vmem>>, vector<12x32xf32>
      tpu.vector_store %arg6[%c0_10, %c0_11], %12 {strides = array<i32>} : memref<12x32xf32, #tpu.memory_space<vmem>>, vector<12x32xf32>,
    } else {
    }
    %c0 = arith.constant 0 : index
    %c0_1 = arith.constant 0 : index
    %3 = vector.load %arg6[%c0, %c0_1] : memref<12x32xf32, #tpu.memory_space<vmem>>, vector<12x32xf32>
    %c0_2 = arith.constant 0 : index
    %c0_3 = arith.constant 0 : index
    %4 = vector.load %arg3[%c0_2, %c0_3] : memref<12x96xf32, #tpu.memory_space<vmem>>, vector<12x96xf32>
    %5 = arith.truncf %4 : vector<12x96xf32> to vector<12x96xbf16>
    %c0_4 = arith.constant 0 : index
    %c0_5 = arith.constant 0 : index
    %6 = vector.load %arg4[%c0_4, %c0_5] : memref<96x32xbf16, #tpu.memory_space<vmem>>, vector<96x32xbf16>
    %cst = arith.constant dense<0.000000e+00> : vector<12x32xf32>
    %7 = tpu.matmul %5, %6, %cst {dimension_numbers = #tpu.dot_dimension_numbers<[1], [0], [0], [1], [0, 0, 1, 1], [], []>} : vector<12x96xbf16>, vector<96x32xbf16>, vector<12x32xf32> -> vector<12x32xf32>
    %8 = arith.addf %3, %7 : vector<12x32xf32>
    %c0_6 = arith.constant 0 : index
    %c0_7 = arith.constant 0 : index
    %9 = vector.load %arg6[%c0_6, %c0_7] : memref<12x32xf32, #tpu.memory_space<vmem>>, vector<12x32xf32>
    tpu.vector_store %arg6[%c0_6, %c0_7], %8 {strides = array<i32>} : memref<12x32xf32, #tpu.memory_space<vmem>>, vector<12x32xf32>,
    return
  }
  func.func @transform_0(%arg0: i32, %arg1: i32, %arg2: i32) -> (i32, i32) {
    %c0_i32 = arith.constant 0 : i32
    return %arg0, %arg2 : i32, i32
  }
  func.func @transform_1(%arg0: i32, %arg1: i32, %arg2: i32) -> (i32, i32) {
    %c0_i32 = arith.constant 0 : i32
    return %arg2, %arg1 : i32, i32
  }
  func.func @transform_2(%arg0: i32, %arg1: i32, %arg2: i32) -> (i32, i32) {
    %c0_i32 = arith.constant 0 : i32
    %c0_i32_0 = arith.constant 0 : i32
    return %c0_i32, %arg1 : i32, i32
  }
  func.func @transform_3(%arg0: i32, %arg1: i32, %arg2: i32) -> (i32, i32) {
    %c0_i32 = arith.constant 0 : i32
    return %arg0, %arg1 : i32, i32
  }
}

</mosaic_0001>

<bundles_post_ra>
// kernel: conv_compress.1
= control target key start
LH: loop header
LB: loop body
LE: loop exit
PB: predicated region body
PF: predicated region fallthrough
CT: control target
= control target key end

     0   :  { %v177_v0 = vmov 0.0   ;;  %vm178_vm0 = vmmov 0   ;;  %vm26_vm1 = vcmask 261120   ;;  %vm83_vm2 = vcmask 785408   ;;  %s246_s1 = inlined_call_operand.vmem [shape: bf16[96,32], index: 1, kind: input, shape index: {}]   ;;  %s247_s2 = inlined_call_operand.vmem [shape: f32[1,32], index: 2, kind: input, shape index: {}]   ;;  %s248_s3 = inlined_call_operand.vmem [shape: f32[12,32], index: 3, kind: output, shape index: {}]   ;;  %s249_s0 = inlined_call_operand.vmem [shape: f32[12,96], index: 0, kind: input, shape index: {}]  }
   0x1   :  { %153 = vmatprep.subr.bf16.mxu0 %v177_v0  ;;  %v171_v1 = vld [vmem:[%s246_s1] sm:$0xff]   ;;  %165 = vmatprep.mubr.msk.bf16.mxu0 %vm178_vm0, %v177_v0  ;;  %v172_v2 = vld [vmem:[%s246_s1 + $0x8] sm:$0xff]   ;;  %v173_v3 = vld [vmem:[%s246_s1 + $0x10] sm:$0xff]   ;;  %vm28_vm3 = vcmask 257024  }
   0x2   :  { %154 = vmatpush3.bf16.msra.mxu0 %v171_v1  ;;  %v138_v4 = vld [vmem:[%s247_s2] ss:$0 sm:$0xff]  ;;  %v174_v5 = vld [vmem:[%s246_s1 + $0x18] sm:$0xff]   ;;  %v176_v7 = vld [vmem:[%s246_s1 + $0x28] sm:$0xff]  }
   0x3   :  { %155 = vmatprep.subr.bf16.mxu0 %v177_v0  ;;  %27 = vst.msk [vmem:[%s248_s3] sm:$0xff] %vm26_vm1, %v138_v4  ;;  %v175_v6 = vld [vmem:[%s246_s1 + $0x20] sm:$0xff]   ;;  %v33_v9 = vld [vmem:[%s249_s0 + $0x8] sm:$0xf] }
   0x4   :  { %v32_v8 = vld [vmem:[%s249_s0] sm:$0xff]  ;;  %29 = vst.msk [vmem:[%s248_s3 + $0x8] sm:$0xf] %vm28_vm3, %v138_v4 }
   0x5   :  { %v34_v10 = vpack.c.bf16 %v33_v9, %v32_v8 }
   0x6   :  { %156 = vmatpush3.bf16.msra.mxu0 %v172_v2 }
   0x7   :  { %157 = vmatprep.subr.bf16.mxu0 %v177_v0 }
   0xa   :  { %158 = vmatpush3.bf16.msra.mxu0 %v173_v3  ;;  %v30_v11 = vld [vmem:[%s248_s3] sm:$0xff] }
   0xb   :  { %159 = vmatprep.subr.bf16.mxu0 %v177_v0  ;;  %v31_v13 = vld [vmem:[%s248_s3 + $0x8] sm:$0xf] }
   0xe   :  { %160 = vmatpush3.bf16.msra.mxu0 %v174_v5 }
   0xf   :  { %161 = vmatprep.subr.bf16.mxu0 %v177_v0 }
  0x12   :  { %162 = vmatpush3.bf16.msra.mxu0 %v175_v6 }
  0x13   :  { %163 = vmatprep.subr.bf16.mxu0 %v177_v0 }
  0x16   :  { %164 = vmatpush3.bf16.msra.mxu0 %v176_v7 }
  0x19   :  { %166 = vmatmul.mubr.msk.bf16.vlgmr.msra.gmra.mrb[0].mxu0 %vm83_vm2, %v34_v10 }
  0xec   :  { %v121_v12 = vpop.f32.mrb[0].mxu0 }
  0xed   :  { %v128_v14 = vadd.f32 %v121_v12, %v30_v11  ;;  %v167_v15 = vpop.f32.mrb[1].mxu0 }
  0xee   :  { %v124_v16 = vpop.f32.mrb[2].mxu0 }
  0xef   :  { %131 = vst.msk [vmem:[%s248_s3] sm:$0xff] %vm26_vm1, %v128_v14  ;;  %v129_v17 = vadd.f32 %v124_v16, %v31_v13  ;;  %v168_v18 = vpop.f32.mrb[3].mxu0 }
  0xf1   :  { %133 = vst.msk [vmem:[%s248_s3 + $0x8] sm:$0xf] %vm28_vm3, %v129_v17 }

</bundles_post_ra>
